<compile_context>
chip_gen: v7x
topology: tpu7x:2x2x1
jax: 0.10.0
libtpu: 0.0.40
codegen_flags: <defaults>
</compile_context>

<pallas_src>
import jax
import jax.numpy as jnp
from jax.experimental import pallas as pl
from jax.experimental.pallas import tpu as pltpu

_LN2 = 0.6931471805599453
_E_LOGCOSH = 0.3745672          # E[log cosh(v)],      v ~ N(0, 1)
_E_EXP = -0.7071067811865476    # E[-exp(-v^2 / 2)] = -1/sqrt(2)


def negentropy_kernel(y_ref, out_ref):
    y = y_ref[...].astype(jnp.float32)          # [TB, N], upcast in-register
    n = y.shape[1]
    inv_n = jnp.float32(1.0 / n)
    inv_nm1 = jnp.float32(1.0 / max(n - 1, 1))  # torch.std is unbiased (ddof=1)

    # ---- normalize along dim=1 (one-pass mean/var) ----
    s1 = jnp.sum(y, axis=1, keepdims=True)
    s2 = jnp.sum(y * y, axis=1, keepdims=True)
    mean = s1 * inv_n
    # clamp protects padded last-block rows / cancellation from producing NaN
    var = jnp.maximum((s2 - mean * s1) * inv_nm1, 0.0)
    inv_std = 1.0 / (jnp.sqrt(var) + 1e-9)      # per-row; matches torch (std + 1e-9)
    yn = (y - mean) * inv_std
    yn2 = yn * yn

    # ---- stable log-cosh contrast: log(cosh x) = |x| + log1p(exp(-2|x|)) - ln2 ----
    a = jnp.abs(yn)
    g_logcosh = a + jnp.log1p(jnp.exp(-2.0 * a)) - _LN2
    g_exp = -jnp.exp(-0.5 * yn2)

    # ---- negentropy estimates: mean over dim=1 minus Gaussian expectation ----
    neg_lc = jnp.sum(g_logcosh, axis=1, keepdims=True) * inv_n - _E_LOGCOSH
    neg_ex = jnp.sum(g_exp, axis=1, keepdims=True) * inv_n - _E_EXP

    out_ref[...] = -(neg_lc * neg_lc + neg_ex * neg_ex)          # [TB, 1]


def _choose_block_rows(B, N, vmem_budget_bytes=10 * 1024 * 1024,
                       live_tiles=6, min_blocks=4):
    """Rows per tile.

    `live_tiles` ~= 2 double-buffered input copies + ~4 live f32 temporaries of
    a [TB, N] tile; the 10 MiB budget keeps the total comfortably under the
    16 MiB default scoped-VMEM limit on v5e (32 MiB on v6e/v7x).  We also cap
    TB so the grid has >= `min_blocks` steps when B allows, for v7x 2-TC
    sharding and to pipeline the HBM read.
    """
    rows_vmem = max(8, vmem_budget_bytes // (max(N, 1) * 4 * live_tiles))
    rows_split = max(8, pl.cdiv(B, min_blocks))
    rows = min(rows_vmem, rows_split)
    if rows >= B:
        return B                      # single block covers the whole batch
    return max(8, (rows // 8) * 8)    # keep the sublane dim a multiple of 8


def negentropy_loss(y, block_rows=None):
    """JAX/Pallas equivalent of NegentropyLoss.forward(y) for 2-D y [B, N]."""
    B, N = y.shape
    TB = block_rows if block_rows is not None else _choose_block_rows(B, N)

    out2d = pl.pallas_call(
        negentropy_kernel,
        out_shape=jax.ShapeDtypeStruct((B, 1), jnp.float32),
        grid=(pl.cdiv(B, TB),),
        in_specs=[pl.BlockSpec((TB, N), lambda i: (i, 0))],
        out_specs=pl.BlockSpec((TB, 1), lambda i: (i, 0)),
        compiler_params=pltpu.CompilerParams(
            dimension_semantics=("parallel",),   # rows are independent
        ),
    )(y)
    return out2d[:, 0]   # [B], matches PyTorch return shape


if __name__ == "__main__":
    key = jax.random.PRNGKey(0)
    k_in, _ = jax.random.split(key)

    # Small deterministic input consistent with the module (dim=1 = feature axis).
    B, N = 8, 512
    y = 1.7 * jax.random.normal(k_in, (B, N), dtype=jnp.float32) + 0.3

    out = negentropy_loss(y)
    jax.block_until_ready(out)

    # Pure-JAX reference of the same estimator (closed-form E[G(v)] terms),
    # same constants -> tight tolerance checks normalization + contrast math.
    mean = jnp.mean(y, axis=1, keepdims=True)
    std = jnp.std(y, axis=1, keepdims=True, ddof=1)
    yn = (y - mean) / (std + 1e-9)
    a = jnp.mean(jnp.log(jnp.cosh(yn)), axis=1) - _E_LOGCOSH
    b = jnp.mean(-jnp.exp(-yn ** 2 / 2), axis=1) - _E_EXP
    ref = -(a ** 2 + b ** 2)

    assert out.shape == (B,)
    assert bool(jnp.all(jnp.isfinite(out)))
    assert bool(jnp.all(out <= 1e-6))            # -negentropy is non-positive
    assert float(jnp.max(jnp.abs(out - ref))) < 1e-4, (out, ref)
    print("KERNEL_OK")
</pallas_src>

<mosaic_0001>
module attributes {stable_mosaic.version = 11 : i64} {
  func.func @negentropy_kernel(%arg0: i32, %arg1: memref<8x512xf32, #tpu.memory_space<vmem>>, %arg2: memref<8x1xf32, #tpu.memory_space<vmem>>) attributes {dimension_semantics = [#tpu.dimension_semantics<parallel>], iteration_bounds = array<i64: 1>, scalar_prefetch = 0 : i64, scratch_operands = 0 : i64, tpu.core_type = #tpu.core_type<tc>, window_params = [{transform_indices = @transform_0, window_bounds = array<i64: 8, 512>}, {transform_indices = @transform_1, window_bounds = array<i64: 8, 1>}]} {
    %c0 = arith.constant 0 : index
    %c0_0 = arith.constant 0 : index
    %0 = vector.load %arg1[%c0, %c0_0] : memref<8x512xf32, #tpu.memory_space<vmem>>, vector<8x512xf32>
    %cst = arith.constant dense<0.000000e+00> : vector<8xf32>
    %1 = vector.multi_reduction <add>, %0, %cst [1] : vector<8x512xf32> to vector<8xf32>
    %2 = vector.shape_cast %1 : vector<8xf32> to vector<8x1xf32>
    %3 = arith.mulf %0, %0 : vector<8x512xf32>
    %cst_1 = arith.constant dense<0.000000e+00> : vector<8xf32>
    %4 = vector.multi_reduction <add>, %3, %cst_1 [1] : vector<8x512xf32> to vector<8xf32>
    %5 = vector.shape_cast %4 : vector<8xf32> to vector<8x1xf32>
    %cst_2 = arith.constant 0.001953125 : f32
    %6 = vector.broadcast %cst_2 : f32 to vector<8x1xf32>
    %7 = arith.mulf %2, %6 : vector<8x1xf32>
    %8 = arith.mulf %7, %2 : vector<8x1xf32>
    %9 = arith.subf %5, %8 : vector<8x1xf32>
    %cst_3 = arith.constant 0.00195694715 : f32
    %10 = vector.broadcast %cst_3 : f32 to vector<8x1xf32>
    %11 = arith.mulf %9, %10 : vector<8x1xf32>
    %cst_4 = arith.constant 0.000000e+00 : f32
    %12 = vector.broadcast %cst_4 : f32 to vector<8x1xf32>
    %13 = arith.maximumf %11, %12 : vector<8x1xf32>
    %14 = math.sqrt %13 : vector<8x1xf32>
    %cst_5 = arith.constant 9.99999971E-10 : f32
    %15 = vector.broadcast %cst_5 : f32 to vector<8x1xf32>
    %16 = arith.addf %14, %15 : vector<8x1xf32>
    %cst_6 = arith.constant 1.000000e+00 : f32
    %17 = vector.broadcast %cst_6 : f32 to vector<8x1xf32>
    %18 = arith.divf %17, %16 : vector<8x1xf32>
    %19 = vector.broadcast %7 : vector<8x1xf32> to vector<8x512xf32>
    %20 = arith.subf %0, %19 : vector<8x512xf32>
    %21 = vector.broadcast %18 : vector<8x1xf32> to vector<8x512xf32>
    %22 = arith.mulf %20, %21 : vector<8x512xf32>
    %23 = arith.mulf %22, %22 : vector<8x512xf32>
    %24 = math.absf %22 : vector<8x512xf32>
    %cst_7 = arith.constant -2.000000e+00 : f32
    %25 = vector.broadcast %cst_7 : f32 to vector<8x512xf32>
    %26 = arith.mulf %25, %24 : vector<8x512xf32>
    %27 = math.exp %26 : vector<8x512xf32>
    %28 = math.log1p %27 : vector<8x512xf32>
    %29 = arith.addf %24, %28 : vector<8x512xf32>
    %cst_8 = arith.constant 0.693147182 : f32
    %30 = vector.broadcast %cst_8 : f32 to vector<8x512xf32>
    %31 = arith.subf %29, %30 : vector<8x512xf32>
    %cst_9 = arith.constant -5.000000e-01 : f32
    %32 = vector.broadcast %cst_9 : f32 to vector<8x512xf32>
    %33 = arith.mulf %32, %23 : vector<8x512xf32>
    %34 = math.exp %33 : vector<8x512xf32>
    %cst_10 = arith.constant 0.000000e+00 : f32
    %35 = vector.broadcast %cst_10 : f32 to vector<8x512xf32>
    %36 = arith.subf %35, %34 : vector<8x512xf32>
    %cst_11 = arith.constant dense<0.000000e+00> : vector<8xf32>
    %37 = vector.multi_reduction <add>, %31, %cst_11 [1] : vector<8x512xf32> to vector<8xf32>
    %38 = vector.shape_cast %37 : vector<8xf32> to vector<8x1xf32>
    %cst_12 = arith.constant 0.001953125 : f32
    %39 = vector.broadcast %cst_12 : f32 to vector<8x1xf32>
    %40 = arith.mulf %38, %39 : vector<8x1xf32>
    %cst_13 = arith.constant 0.374567211 : f32
    %41 = vector.broadcast %cst_13 : f32 to vector<8x1xf32>
    %42 = arith.subf %40, %41 : vector<8x1xf32>
    %cst_14 = arith.constant dense<0.000000e+00> : vector<8xf32>
    %43 = vector.multi_reduction <add>, %36, %cst_14 [1] : vector<8x512xf32> to vector<8xf32>
    %44 = vector.shape_cast %43 : vector<8xf32> to vector<8x1xf32>
    %cst_15 = arith.constant 0.001953125 : f32
    %45 = vector.broadcast %cst_15 : f32 to vector<8x1xf32>
    %46 = arith.mulf %44, %45 : vector<8x1xf32>
    %cst_16 = arith.constant -0.707106769 : f32
    %47 = vector.broadcast %cst_16 : f32 to vector<8x1xf32>
    %48 = arith.subf %46, %47 : vector<8x1xf32>
    %49 = arith.mulf %42, %42 : vector<8x1xf32>
    %50 = arith.mulf %48, %48 : vector<8x1xf32>
    %51 = arith.addf %49, %50 : vector<8x1xf32>
    %cst_17 = arith.constant 0.000000e+00 : f32
    %52 = vector.broadcast %cst_17 : f32 to vector<8x1xf32>
    %53 = arith.subf %52, %51 : vector<8x1xf32>
    %c0_18 = arith.constant 0 : index
    %c0_19 = arith.constant 0 : index
    %54 = vector.load %arg2[%c0_18, %c0_19] : memref<8x1xf32, #tpu.memory_space<vmem>>, vector<8x1xf32>
    tpu.vector_store %arg2[%c0_18, %c0_19], %53 {strides = array<i32>} : memref<8x1xf32, #tpu.memory_space<vmem>>, vector<8x1xf32>,
    return
  }
  func.func @transform_0(%arg0: i32) -> (i32, i32) {
    %c0_i32 = arith.constant 0 : i32
    %c0_i32_0 = arith.constant 0 : i32
    return %arg0, %c0_i32 : i32, i32
  }
  func.func @transform_1(%arg0: i32) -> (i32, i32) {
    %c0_i32 = arith.constant 0 : i32
    %c0_i32_0 = arith.constant 0 : i32
    return %arg0, %c0_i32 : i32, i32
  }
}

</mosaic_0001>

<bundles_post_ra>
// kernel: tpu_custom_call.1
= control target key start
LH: loop header
LB: loop body
LE: loop exit
PB: predicated region body
PF: predicated region fallthrough
CT: control target
= control target key end

     0   :  { %6 = vsyncpa [#allocation3], 0  ;;  %s225_s6 = smov [#allocation2]   ;;  %s287_s0 = inlined_call_operand.hbm [shape: f32[8,512], index: 0, kind: input, shape index: {}]   ;;  %s288_s1 = inlined_call_operand.vmem [shape: f32[8,1], index: 1, kind: output, shape index: {}]  }
   0x1   :  { %s13_s7 = sshll.u32 %s225_s6, 4  ;;  %s201_s10 = scalar_lea.hbm %s287_s0, 512  ;;  %s14_s7 = int_to_ptr.vmem [resolvable:$true] %s13_s7 }
   0x2   :  { %p202_p0 = scmp.ne.s32.totalorder %s287_s0, %s201_s10  ;;  %p205_p1 = scmp.lt.u32.totalorder %s201_s10, %s287_s0 }
   0x4   :  { %p207_p2 = pnand %p205_p1, %p202_p0 }
   0x6   :  { %210 = shalt.err (!%p207_p2)
}
   0x7   :  { %s211_s15 = scalar_lea.vmem %s14_s7, 512  ;;  %p216_p4 = scmp.lt.s32.totalorder %s14_s7, %s14_s7 }
   0x8   :  { %p212_p3 = scmp.ne.s32.totalorder %s14_s7, %s211_s15  ;;  %p217_p5 = scmp.lt.s32.totalorder %s211_s15, %s211_s15 }
   0xa   :  { %p218_p6 = por %p217_p5, %p216_p4 }
   0xc   :  { %p219_p7 = pnand %p218_p6, %p212_p3 }
   0xe   :  { %222 = shalt.err (!%p219_p7)
}
   0xf   :  { %16 = dma.hbm_to_vmem [thread:$0]  %s287_s0, 512, %s14_s7, [#allocation3]  }
  0x10   :  { %223 = dma.done.wait [#allocation3], 512  }
  0x11   :  { %224 = vsyncadd [#allocation3], 4294966784  ;;  %v20_v0 = vld [vmem:[#allocation2] sm:$0xff]  ;;  %v21_v1 = vld [vmem:[#allocation2 + $0x8] sm:$0xff]  ;;  %vm159_vm6 = vcmask 7168  }
  0x12   :  { %v22_v2 = vld [vmem:[#allocation2 + $0x10] sm:$0xff]  ;;  %v24_v3 = vadd.f32 %v21_v1, %v20_v0  ;;  %v29_v4 = vmul.f32 %v20_v0, %v20_v0  ;;  %v30_v5 = vmul.f32 %v21_v1, %v21_v1  ;;  %v23_v7 = vld [vmem:[#allocation2 + $0x18] sm:$0xff] }
  0x13   :  { %v31_v6 = vmul.f32 %v22_v2, %v22_v2  ;;  %v32_v9 = vmul.f32 %v23_v7, %v23_v7 }
  0x14   :  { %v25_v8 = vadd.f32 %v24_v3, %v22_v2  ;;  %v33_v10 = vadd.f32 %v30_v5, %v29_v4 }
  0x16   :  { %v26_v11 = vadd.f32 %v25_v8, %v23_v7  ;;  %v34_v12 = vadd.f32 %v33_v10, %v31_v6 }
  0x18   :  { %27 = vadd.xlane.f32.xlu0 %v26_v11  ;;  %v35_v13 = vadd.f32 %v34_v12, %v32_v9 }
  0x1c   :  { %36 = vadd.xlane.f32.xlu0 %v35_v13 }
  0xa5   :  { %v28_v14 = vpop.xlane.xlu0 %27 }
  0xa6   :  { %v38_v15 = vmul.f32 0.001953125, %v28_v14 }
  0xa8   :  { %v39_v16 = vmul.f32 %v38_v15, %v28_v14  ;;  %v53_v27 = vsub.f32 %v20_v0, %v38_v15  ;;  %v54_v28 = vsub.f32 %v21_v1, %v38_v15  ;;  %v55_v29 = vsub.f32 %v22_v2, %v38_v15 }
  0xa9   :  { %v37_v17 = vpop.xlane.xlu0 %36  ;;  %v56_v30 = vsub.f32 %v23_v7, %v38_v15 }
  0xaa   :  { %v40_v18 = vsub.f32 %v37_v17, %v39_v16 }
  0xac   :  { %v41_v19 = vmul.f32 0.0019569471, %v40_v18 }
  0xae   :  { %v42_v20 = vmax.f32 %v41_v19, 0.0 }
  0xb0   :  { %173 = vrsqrt.f32 %v42_v20  ;;  %vm45_vm0 = vcmp.eq.f32.partialorder %v42_v20, inf  ;;  %v48_v23 = vand.u32 2147483648, %v42_v20  ;;  %vm47_vm1 = vcmp.eq.f32.partialorder %v42_v20, 0.0 }
  0xba   :  { %v174_v21 = vpop.eup %173 }
  0xbb   :  { %v44_v22 = vmul.f32 %v174_v21, %v42_v20 }
  0xbd   :  { %v46_v24 = vsel %vm45_vm0, %v42_v20, %v44_v22 }
  0xbe   :  { %v49_v25 = vsel %vm47_vm1, %v48_v23, %v46_v24 }
  0xbf   :  { %v50_v26 = vadd.f32 1e-09, %v49_v25 }
  0xc1   :  { %175 = vrcp.f32 %v50_v26 }
  0xcb   :  { %v176_v31 = vpop.eup %175 }
  0xcc   :  { %v248_v32 = vmul.f32 %v176_v31, %v53_v27  ;;  %v250_v33 = vmul.f32 %v176_v31, %v54_v28  ;;  %v252_v34 = vmul.f32 %v176_v31, %v55_v29  ;;  %v254_v35 = vmul.f32 %v176_v31, %v56_v30 }
  0xce   :  { %v65_v36 = vand.u32 2147483647, %v248_v32  ;;  %v66_v37 = vand.u32 2147483647, %v250_v33  ;;  %v67_v38 = vand.u32 2147483647, %v252_v34  ;;  %v61_v48 = vmul.f32 %v248_v32, %v248_v32 }
  0xcf   :  { %v68_v39 = vand.u32 2147483647, %v254_v35  ;;  %v62_v49 = vmul.f32 %v250_v33, %v250_v33  ;;  %v63_v54 = vmul.f32 %v252_v34, %v252_v34  ;;  %v64_v58 = vmul.f32 %v254_v35, %v254_v35 }
  0xd0   :  { %v69_v40 = vmul.f32 -2.0, %v65_v36  ;;  %v70_v41 = vmul.f32 -2.0, %v66_v37  ;;  %v71_v42 = vmul.f32 -2.0, %v67_v38  ;;  %v125_v50 = vmul.f32 -0.5, %v61_v48 }
  0xd1   :  { %v72_v43 = vmul.f32 -2.0, %v68_v39  ;;  %v126_v51 = vmul.f32 -0.5, %v62_v49  ;;  %v127_v63 = vmul.f32 -0.5, %v63_v54  ;;  %v128_v1 = vmul.f32 -0.5, %v64_v58 }
  0xd2   :  { %v73_v44 = vmul.f32 1.442695, %v69_v40  ;;  %v75_v45 = vmul.f32 1.442695, %v70_v41  ;;  %v77_v46 = vmul.f32 1.442695, %v71_v42 }
  0xd3   :  { %v79_v47 = vmul.f32 1.442695, %v72_v43  ;;  %v129_v52 = vmul.f32 1.442695, %v125_v50  ;;  %v131_v53 = vmul.f32 1.442695, %v126_v51 }
  0xd4   :  { %177 = vpow2.f32 %v73_v44  ;;  %v133_v4 = vmul.f32 1.442695, %v127_v63  ;;  %v135_v6 = vmul.f32 1.442695, %v128_v1 }
  0xd5   :  { %179 = vpow2.f32 %v75_v45 }
  0xd6   :  { %181 = vpow2.f32 %v77_v46 }
  0xd7   :  { %183 = vpow2.f32 %v79_v47 }
  0xd8   :  { %185 = vpow2.f32 %v129_v52 }
  0xd9   :  { %187 = vpow2.f32 %v131_v53 }
  0xde   :  { %v178_v55 = vpop.eup %177 }
  0xdf   :  { %v180_v56 = vpop.eup %179  ;;  %v81_v57 = vadd.f32 1.0, %v178_v55  ;;  %v84_v2 = vmul.f32 -0.5, %v178_v55  ;;  %v87_v8 = vand.u32 2147483647, %v178_v55 }
  0xe0   :  { %v182_v59 = vpop.eup %181  ;;  %v90_v60 = vadd.f32 1.0, %v180_v56  ;;  %v93_v3 = vmul.f32 -0.5, %v180_v56  ;;  %v96_v12 = vand.u32 2147483647, %v180_v56 }
  0xe1   :  { %v184_v61 = vpop.eup %183  ;;  %189 = vlog2.f32 %v81_v57  ;;  %v99_v62 = vadd.f32 1.0, %v182_v59  ;;  %v102_v5 = vmul.f32 -0.5, %v182_v59  ;;  %v85_v7 = vadd.f32 1.0, %v84_v2 }
  0xe2   :  { %191 = vlog2.f32 %v90_v60  ;;  %v108_v0 = vadd.f32 1.0, %v184_v61  ;;  %v111_v9 = vmul.f32 -0.5, %v184_v61  ;;  %v186_v10 = vpop.eup %185  ;;  %v94_v11 = vadd.f32 1.0, %v93_v3 }
  0xe3   :  { %193 = vlog2.f32 %v99_v62  ;;  %v188_v13 = vpop.eup %187  ;;  %v103_v14 = vadd.f32 1.0, %v102_v5  ;;  %v105_v15 = vand.u32 2147483647, %v182_v59  ;;  %v86_v19 = vmul.f32 %v178_v55, %v85_v7 }
  0xe4   :  { %195 = vlog2.f32 %v108_v0  ;;  %vm88_vm2 = vcmp.lt.f32.partialorder %v87_v8, 0.0004427343  ;;  %v112_v20 = vadd.f32 1.0, %v111_v9  ;;  %v95_v23 = vmul.f32 %v180_v56, %v94_v11 }
  0xe5   :  { %197 = vpow2.f32 %v133_v4  ;;  %vm97_vm3 = vcmp.lt.f32.partialorder %v96_v12, 0.0004427343  ;;  %v114_v24 = vand.u32 2147483647, %v184_v61  ;;  %v104_v27 = vmul.f32 %v182_v59, %v103_v14 }
  0xe6   :  { %199 = vpow2.f32 %v135_v6  ;;  %vm106_vm4 = vcmp.lt.f32.partialorder %v105_v15, 0.0004427343  ;;  %v137_v31 = vsub.f32 0.0, %v186_v10  ;;  %v138_v40 = vsub.f32 0.0, %v188_v13 }
  0xe7   :  { %v113_v43 = vmul.f32 %v184_v61, %v112_v20  ;;  %vm115_vm5 = vcmp.lt.f32.partialorder %v114_v24, 0.0004427343 }
  0xe8   :  { %v148_v51 = vadd.f32 %v138_v40, %v137_v31 }
  0xeb   :  { %v190_v16 = vpop.eup %189 }
  0xec   :  { %v192_v17 = vpop.eup %191  ;;  %v83_v18 = vmul.f32 0.6931472, %v190_v16 }
  0xed   :  { %v194_v21 = vpop.eup %193  ;;  %v92_v22 = vmul.f32 0.6931472, %v192_v17 }
  0xee   :  { %v89_v25 = vsel %vm88_vm2, %v86_v19, %v83_v18  ;;  %v101_v26 = vmul.f32 0.6931472, %v194_v21  ;;  %v196_v28 = vpop.eup %195 }
  0xef   :  { %v98_v29 = vsel %vm97_vm3, %v95_v23, %v92_v22  ;;  %v117_v30 = vadd.f32 %v89_v25, %v65_v36  ;;  %v110_v42 = vmul.f32 0.6931472, %v196_v28  ;;  %v198_v49 = vpop.eup %197 }
  0xf0   :  { %v107_v41 = vsel %vm106_vm4, %v104_v27, %v101_v26  ;;  %v118_v44 = vadd.f32 %v98_v29, %v66_v37  ;;  %v200_v52 = vpop.eup %199  ;;  %v139_v55 = vsub.f32 0.0, %v198_v49 }
  0xf1   :  { %v119_v45 = vadd.f32 %v107_v41, %v67_v38  ;;  %v166_v46 = vadd.f32 -0.6931472, %v117_v30  ;;  %v116_v47 = vsel %vm115_vm5, %v113_v43, %v110_v42  ;;  %v140_v56 = vsub.f32 0.0, %v200_v52 }
  0xf2   :  { %v167_v48 = vadd.f32 -0.6931472, %v118_v44  ;;  %v120_v32 = vadd.f32 %v116_v47, %v68_v39  ;;  %v149_v37 = vadd.f32 %v148_v51, %v139_v55 }
  0xf3   :  { %v168_v36 = vadd.f32 -0.6931472, %v119_v45 }
  0xf4   :  { %v141_v50 = vadd.f32 %v167_v48, %v166_v46  ;;  %v169_v53 = vadd.f32 -0.6931472, %v120_v32  ;;  %v150_v34 = vadd.f32 %v149_v37, %v140_v56 }
  0xf6   :  { %v142_v54 = vadd.f32 %v168_v36, %v141_v50 }
  0xf8   :  { %v143_v33 = vadd.f32 %v169_v53, %v142_v54 }
  0xfa   :  { %144 = vadd.xlane.f32.xlu1 %v143_v33 }
  0xfe   :  { %151 = vadd.xlane.f32.xlu1 %v150_v34 }
 0x187   :  { %v145_v38 = vpop.xlane.xlu1 %144 }
 0x188   :  { %v146_v57 = vmul.f32 0.001953125, %v145_v38 }
 0x18a   :  { %v170_v59 = vadd.f32 -0.3745672, %v146_v57 }
 0x18b   :  { %v152_v58 = vpop.xlane.xlu1 %151 }
 0x18c   :  { %v153_v60 = vmul.f32 0.001953125, %v152_v58  ;;  %v155_v39 = vmul.f32 %v170_v59, %v170_v59 }
 0x18e   :  { %v171_v35 = vadd.f32 0.70710677, %v153_v60 }
 0x190   :  { %v156_v61 = vmul.f32 %v171_v35, %v171_v35 }
 0x192   :  { %v157_v62 = vadd.f32 %v156_v61, %v155_v39 }
 0x194   :  { %v158_v63 = vsub.f32 0.0, %v157_v62 }
 0x196   :  { %160 = vst.msk [vmem:[%s288_s1] sm:$0xff] %vm159_vm6, %v158_v63 }
 0x197   :  { %165 = vsyncpa [#allocation3], 1 }

</bundles_post_ra>
